<compile_context>
chip_gen: v6e
topology: v6e:2x2x1
jax: 0.10.0
libtpu: 0.0.40
codegen_flags: <defaults>
</compile_context>

<pallas_src>
import jax
import jax.numpy as jnp
import numpy as np
from jax.experimental import pallas as pl
from jax.experimental.pallas import tpu as pltpu


def sap_kernel(x_ref, w1_ref, b1_ref, w2_ref, o_ref):
    # x_ref: (TB, W, C)  -- channel axis on lanes, time axis on sublanes
    TB, W, C = x_ref.shape
    x = x_ref[...]                                   # f32 or bf16
    xm = x.reshape(TB * W, C)

    # Conv1d(C -> dim, k=1): (TB*W, C) @ (C, dim) + bias, then ReLU (f32 accumulate)
    h = jnp.dot(xm, w1_ref[...], preferred_element_type=jnp.float32)   # (TB*W, dim)
    h = jnp.maximum(h + b1_ref[...], 0.0)

    # BN folded into conv2 weight: (TB*W, dim) @ (dim, C)  (additive terms dropped:
    # they are constant over the time axis and cancel in the softmax)
    logits = jnp.dot(h.astype(w2_ref.dtype), w2_ref[...],
                     preferred_element_type=jnp.float32)               # (TB*W, C)
    logits = logits.reshape(TB, W, C)

    # Softmax over the time axis (axis=1 here == PyTorch dim=2), unnormalized pooling.
    m = jnp.max(logits, axis=1, keepdims=True)                         # (TB, 1, C)
    e = jnp.exp(logits - m)                                            # (TB, W, C)
    xf = x.astype(jnp.float32)
    num = jnp.sum(e * xf, axis=1)                                      # (TB, C)
    den = jnp.sum(e, axis=1)                                           # (TB, C)
    o_ref[...] = (num * pl.reciprocal(den, approx=True)).astype(o_ref.dtype)


def _pick_tb(b, w, c, bytes_per_elem=4, vmem_cap=4 * 1024 * 1024):
    """Pick batch tile TB: divides b, (TB % 8 == 0 or TB == b), prefer TB*W >= 256."""
    target = max(1, -(-256 // w))
    valid = [tb for tb in range(1, b + 1) if b % tb == 0 and (tb == b or tb % 8 == 0)]
    fitting = [tb for tb in valid if tb * w * c * bytes_per_elem <= vmem_cap] or valid
    for tb in fitting:
        if tb >= target:
            return tb
    return fitting[-1]


def sap_forward(x, params, *, matmul_dtype=jnp.float32):
    """x: (b, c, h, w) float32.  Returns (b, c*h) float32."""
    b, c, h, w = x.shape
    C = c * h
    W = w
    dim = params["w1"].shape[0]

    # PyTorch NCW -> (B, W, C): channel axis on lanes (layout plumbing in the wrapper).
    x3 = jnp.transpose(x.reshape(b, C, W), (0, 2, 1))

    # Fold inference-mode BatchNorm into conv2; drop conv2 bias + BN shift (cancel in softmax).
    scale = params["gamma"] * jax.lax.rsqrt(params["var"] + 1e-5)       # (dim,)
    w1t = params["w1"].T                                                 # (C, dim)
    b1r = params["b1"].reshape(1, dim).astype(jnp.float32)               # row vector
    w2t = params["w2"].T * scale[:, None]                                # (dim, C)

    xk = x3.astype(matmul_dtype)
    w1k = w1t.astype(matmul_dtype)
    w2k = w2t.astype(matmul_dtype)

    TB = _pick_tb(b, W, C, bytes_per_elem=jnp.dtype(matmul_dtype).itemsize)
    grid = (b // TB,)

    const = lambda shape: pl.BlockSpec(shape, lambda i: (0,) * len(shape))

    return pl.pallas_call(
        sap_kernel,
        out_shape=jax.ShapeDtypeStruct((b, C), jnp.float32),
        grid_spec=pltpu.PrefetchScalarGridSpec(
            num_scalar_prefetch=0,
            grid=grid,
            in_specs=[
                pl.BlockSpec((TB, W, C), lambda i: (i, 0, 0)),  # X tile (TB batch elems)
                const((C, dim)),                                 # conv1 weight^T
                const((1, dim)),                                 # conv1 bias (row vector)
                const((dim, C)),                                 # conv2 weight^T * BN scale
            ],
            out_specs=pl.BlockSpec((TB, C), lambda i: (i, 0)),
        ),
        compiler_params=pltpu.CompilerParams(
            dimension_semantics=("parallel",),
            vmem_limit_bytes=64 * 1024 * 1024,
        ),
    )(xk, w1k, b1r, w2k)


def sap_reference(x, params):
    b, c, h, w = x.shape
    C = c * h
    dim = params["w1"].shape[0]
    x3 = x.reshape(b, C, w).astype(jnp.float32)
    h1 = jnp.einsum("dc,bcw->bdw", params["w1"], x3) + params["b1"].reshape(1, dim, 1)
    h1 = jnp.maximum(h1, 0.0)
    h1 = (h1 - params["mu"].reshape(1, dim, 1)) * jax.lax.rsqrt(
        params["var"].reshape(1, dim, 1) + 1e-5
    ) * params["gamma"].reshape(1, dim, 1) + params["beta"].reshape(1, dim, 1)
    logits = jnp.einsum("cd,bdw->bcw", params["w2"], h1) + params["b2"].reshape(1, C, 1)
    att = jax.nn.softmax(logits, axis=2)
    return jnp.sum(att * x3, axis=2)


def make_params(key, out_size, dim):
    ks = jax.random.split(key, 8)
    # Conv1d(k=1) weights, PyTorch shape (out_ch, in_ch, 1) squeezed to (out_ch, in_ch)
    w1 = jax.random.normal(ks[0], (dim, out_size), jnp.float32) * 0.05
    b1 = jax.random.normal(ks[1], (dim,), jnp.float32) * 0.05
    w2 = jax.random.normal(ks[2], (out_size, dim), jnp.float32) * 0.05
    b2 = jax.random.normal(ks[3], (out_size,), jnp.float32) * 0.05
    # BatchNorm1d(dim) params / running stats (deterministic, non-trivial)
    gamma = 1.0 + 0.1 * jax.random.normal(ks[4], (dim,), jnp.float32)
    beta = 0.1 * jax.random.normal(ks[5], (dim,), jnp.float32)
    mu = 0.1 * jax.random.normal(ks[6], (dim,), jnp.float32)
    var = 1.0 + 0.1 * jax.nn.softplus(jax.random.normal(ks[7], (dim,), jnp.float32))
    return dict(w1=w1, b1=b1, w2=w2, b2=b2, gamma=gamma, beta=beta, mu=mu, var=var)


if __name__ == "__main__":
    key = jax.random.PRNGKey(0)
    k_x, k_p = jax.random.split(key)

    # small shapes: batch=2, channels=8, h=16, w=16  ->  out_size = c*h = 128, dim = 128
    b, c, h, w = 2, 8, 16, 16
    out_size, dim = c * h, 128

    x = jax.random.normal(k_x, (b, c, h, w), jnp.float32)
    params = make_params(k_p, out_size, dim)

    ref = jax.block_until_ready(sap_reference(x, params))

    # f32 matmul path (tolerance accounts for approx reciprocal + BN fold reassociation)
    out_f32 = jax.block_until_ready(sap_forward(x, params))
    np.testing.assert_allclose(np.asarray(out_f32), np.asarray(ref), rtol=2e-3, atol=1e-3)

    # bf16 matmul path (v6e/v7x MXU-friendly); elementwise/softmax math stays f32
    out_bf16 = jax.block_until_ready(sap_forward(x, params, matmul_dtype=jnp.bfloat16))
    np.testing.assert_allclose(np.asarray(out_bf16), np.asarray(ref), rtol=5e-2, atol=2e-2)

    print("KERNEL_OK")
</pallas_src>

<mosaic_0001>
module attributes {stable_mosaic.version = 11 : i64} {
  func.func @sap_kernel(%arg0: i32, %arg1: memref<2x16x128xf32, #tpu.memory_space<vmem>>, %arg2: memref<128x128xf32, #tpu.memory_space<vmem>>, %arg3: memref<1x128xf32, #tpu.memory_space<vmem>>, %arg4: memref<128x128xf32, #tpu.memory_space<vmem>>, %arg5: memref<2x128xf32, #tpu.memory_space<vmem>>) attributes {dimension_semantics = [#tpu.dimension_semantics<parallel>], iteration_bounds = array<i64: 1>, scalar_prefetch = 0 : i64, scratch_operands = 0 : i64, tpu.core_type = #tpu.core_type<tc>, window_params = [{transform_indices = @transform_0, window_bounds = array<i64: 2, 16, 128>}, {pipeline_mode = #tpu.pipeline_mode<synchronous>, transform_indices = @transform_1, window_bounds = array<i64: 128, 128>}, {pipeline_mode = #tpu.pipeline_mode<synchronous>, transform_indices = @transform_2, window_bounds = array<i64: 1, 128>}, {pipeline_mode = #tpu.pipeline_mode<synchronous>, transform_indices = @transform_3, window_bounds = array<i64: 128, 128>}, {transform_indices = @transform_4, window_bounds = array<i64: 2, 128>}]} {
    %c0 = arith.constant 0 : index
    %c0_0 = arith.constant 0 : index
    %c0_1 = arith.constant 0 : index
    %0 = vector.load %arg1[%c0, %c0_0, %c0_1] : memref<2x16x128xf32, #tpu.memory_space<vmem>>, vector<2x16x128xf32>
    %1 = vector.shape_cast %0 : vector<2x16x128xf32> to vector<32x128xf32>
    %c0_2 = arith.constant 0 : index
    %c0_3 = arith.constant 0 : index
    %2 = vector.load %arg2[%c0_2, %c0_3] : memref<128x128xf32, #tpu.memory_space<vmem>>, vector<128x128xf32>
    %cst = arith.constant dense<0.000000e+00> : vector<32x128xf32>
    %3 = tpu.matmul %1, %2, %cst {dimension_numbers = #tpu.dot_dimension_numbers<[1], [0], [0], [1], [0, 0, 1, 1], [], []>} : vector<32x128xf32>, vector<128x128xf32>, vector<32x128xf32> -> vector<32x128xf32>
    %c0_4 = arith.constant 0 : index
    %c0_5 = arith.constant 0 : index
    %4 = vector.load %arg3[%c0_4, %c0_5] : memref<1x128xf32, #tpu.memory_space<vmem>>, vector<1x128xf32>
    %5 = vector.broadcast %4 : vector<1x128xf32> to vector<32x128xf32>
    %6 = arith.addf %3, %5 : vector<32x128xf32>
    %cst_6 = arith.constant 0.000000e+00 : f32
    %7 = vector.broadcast %cst_6 : f32 to vector<32x128xf32>
    %8 = arith.maximumf %6, %7 : vector<32x128xf32>
    %c0_7 = arith.constant 0 : index
    %c0_8 = arith.constant 0 : index
    %9 = vector.load %arg4[%c0_7, %c0_8] : memref<128x128xf32, #tpu.memory_space<vmem>>, vector<128x128xf32>
    %cst_9 = arith.constant dense<0.000000e+00> : vector<32x128xf32>
    %10 = tpu.matmul %8, %9, %cst_9 {dimension_numbers = #tpu.dot_dimension_numbers<[1], [0], [0], [1], [0, 0, 1, 1], [], []>} : vector<32x128xf32>, vector<128x128xf32>, vector<32x128xf32> -> vector<32x128xf32>
    %11 = vector.shape_cast %10 : vector<32x128xf32> to vector<2x16x128xf32>
    %cst_10 = arith.constant dense<0xFF800000> : vector<2x128xf32>
    %12 = vector.multi_reduction <maximumf>, %11, %cst_10 [1] : vector<2x16x128xf32> to vector<2x128xf32>
    %13 = vector.shape_cast %12 : vector<2x128xf32> to vector<2x1x128xf32>
    %14 = vector.broadcast %13 : vector<2x1x128xf32> to vector<2x16x128xf32>
    %15 = arith.subf %11, %14 : vector<2x16x128xf32>
    %16 = math.exp %15 : vector<2x16x128xf32>
    %17 = arith.mulf %16, %0 : vector<2x16x128xf32>
    %cst_11 = arith.constant dense<0.000000e+00> : vector<2x128xf32>
    %18 = vector.multi_reduction <add>, %17, %cst_11 [1] : vector<2x16x128xf32> to vector<2x128xf32>
    %cst_12 = arith.constant dense<0.000000e+00> : vector<2x128xf32>
    %19 = vector.multi_reduction <add>, %16, %cst_12 [1] : vector<2x16x128xf32> to vector<2x128xf32>
    %20 = tpu.reciprocal %19 {approx = true} : vector<2x128xf32> -> vector<2x128xf32>
    %21 = arith.mulf %18, %20 : vector<2x128xf32>
    %c0_13 = arith.constant 0 : index
    %c0_14 = arith.constant 0 : index
    %22 = vector.load %arg5[%c0_13, %c0_14] : memref<2x128xf32, #tpu.memory_space<vmem>>, vector<2x128xf32>
    tpu.vector_store %arg5[%c0_13, %c0_14], %21 {strides = array<i32>} : memref<2x128xf32, #tpu.memory_space<vmem>>, vector<2x128xf32>,
    return
  }
  func.func @transform_0(%arg0: i32) -> (i32, i32, i32) {
    %c0_i32 = arith.constant 0 : i32
    %c0_i32_0 = arith.constant 0 : i32
    %c0_i32_1 = arith.constant 0 : i32
    return %arg0, %c0_i32, %c0_i32_0 : i32, i32, i32
  }
  func.func @transform_1(%arg0: i32) -> (i32, i32) {
    %c0_i32 = arith.constant 0 : i32
    %c0_i32_0 = arith.constant 0 : i32
    %c0_i32_1 = arith.constant 0 : i32
    return %c0_i32, %c0_i32_0 : i32, i32
  }
  func.func @transform_2(%arg0: i32) -> (i32, i32) {
    %c0_i32 = arith.constant 0 : i32
    %c0_i32_0 = arith.constant 0 : i32
    %c0_i32_1 = arith.constant 0 : i32
    return %c0_i32, %c0_i32_0 : i32, i32
  }
  func.func @transform_3(%arg0: i32) -> (i32, i32) {
    %c0_i32 = arith.constant 0 : i32
    %c0_i32_0 = arith.constant 0 : i32
    %c0_i32_1 = arith.constant 0 : i32
    return %c0_i32, %c0_i32_0 : i32, i32
  }
  func.func @transform_4(%arg0: i32) -> (i32, i32) {
    %c0_i32 = arith.constant 0 : i32
    %c0_i32_0 = arith.constant 0 : i32
    return %arg0, %c0_i32 : i32, i32
  }
}

</mosaic_0001>

<bundles_post_ra>
// kernel: tpu_custom_call.1
= control target key start
LH: loop header
LB: loop body
LE: loop exit
PB: predicated region body
PF: predicated region fallthrough
CT: control target
= control target key end

     0   :  { %9 = vsyncpa [#allocation3], 0  ;;  %s643_s0 = inlined_call_operand.hbm [shape: f32[2,16,128], index: 0, kind: input, shape index: {}]   ;;  %s644_s1 = inlined_call_operand.hbm [shape: f32[128,128], index: 1, kind: input, shape index: {}]   ;;  %s645_s2 = inlined_call_operand.vmem [shape: f32[1,128], index: 2, kind: input, shape index: {}]   ;;  %s646_s3 = inlined_call_operand.hbm [shape: f32[128,128], index: 3, kind: input, shape index: {}]   ;;  %s647_s4 = inlined_call_operand.hbm [shape: f32[2,128], index: 4, kind: output, shape index: {}]  }
   0x1   :  { %10 = vsyncpa [#allocation6], 0 }
   0x2   :  { %11 = vsyncpa [#allocation4], 0  ;;  %s581_s15 = smov [#allocation5]   ;;  %s582_s17 = smov [#allocation2]  }
   0x3   :  { %s29_s16 = sshll.u32 %s581_s15, 4  ;;  %s17_s18 = sshll.u32 %s582_s17, 4  ;;  %s30_s16 = int_to_ptr.vmem [resolvable:$true] %s29_s16  ;;  %s18_s18 = int_to_ptr.vmem [resolvable:$true] %s17_s18 }
   0x4   :  { %s503_s19 = scalar_lea.vmem %s30_s16, 2048  ;;  %p508_p1 = scmp.lt.s32.totalorder %s30_s16, %s30_s16 }
   0x5   :  { %p504_p0 = scmp.ne.s32.totalorder %s30_s16, %s503_s19  ;;  %p509_p2 = scmp.lt.s32.totalorder %s503_s19, %s503_s19 }
   0x7   :  { %p510_p3 = por %p509_p2, %p508_p1 }
   0x9   :  { %p511_p4 = pnand %p510_p3, %p504_p0 }
   0xb   :  { %514 = shalt.err (!%p511_p4)
}
   0xc   :  { %s583_s20 = smov 128   ;;  %s584_s21 = smov 8  }
   0xd   :  { %35 = dma.hbm_to_vmem [thread:$0]  %s644_s1, 2048, %s30_s16, [#allocation6], %s583_s20, %s583_s20, %s584_s21  }
   0xe   :  { %s523_s24 = scalar_lea.vmem %s18_s18, 512  ;;  %p528_p6 = scmp.lt.s32.totalorder %s18_s18, %s18_s18 }
   0xf   :  { %p524_p5 = scmp.ne.s32.totalorder %s18_s18, %s523_s24  ;;  %p529_p7 = scmp.lt.s32.totalorder %s523_s24, %s523_s24 }
  0x11   :  { %p530_p8 = por %p529_p7, %p528_p6 }
  0x13   :  { %p531_p9 = pnand %p530_p8, %p524_p5 }
  0x15   :  { %534 = shalt.err (!%p531_p9)
}
  0x16   :  { %23 = dma.hbm_to_vmem [thread:$0]  %s643_s0, 512, %s18_s18, [#allocation3], %s583_s20, %s583_s20, %s584_s21  }
  0x17   :  { %s585_s27 = smov [#allocation7]  }
  0x18   :  { %s43_s28 = sshll.u32 %s585_s27, 4  ;;  %s44_s28 = int_to_ptr.vmem [resolvable:$true] %s43_s28 }
  0x19   :  { %s543_s29 = scalar_lea.vmem %s44_s28, 2048  ;;  %p548_p11 = scmp.lt.s32.totalorder %s44_s28, %s44_s28 }
  0x1a   :  { %p544_p10 = scmp.ne.s32.totalorder %s44_s28, %s543_s29  ;;  %p549_p12 = scmp.lt.s32.totalorder %s543_s29, %s543_s29 }
  0x1c   :  { %p550_p13 = por %p549_p12, %p548_p11 }
  0x1e   :  { %p551_p0 = pnand %p550_p13, %p544_p10 }
  0x20   :  { %554 = shalt.err (!%p551_p0)
}
  0x21   :  { %49 = dma.hbm_to_vmem [thread:$0]  %s646_s3, 2048, %s44_s28, [#allocation6], %s583_s20, %s583_s20, %s584_s21  }
  0x22   :  { %575 = dma.done.wait [#allocation3], 512  }
  0x23   :  { %576 = vsyncadd [#allocation3], 4294966784 }
  0x24   :  { %577 = dma.done.wait [#allocation6], 4096  }
  0x25   :  { %578 = vsyncadd [#allocation6], 4294963200  ;;  %v78_v0 = vld [vmem:[#allocation5 + $0x78] sm:$0xff]  ;;  %v77_v1 = vld [vmem:[#allocation5 + $0x70] sm:$0xff]  ;;  %vm340_vm0 = vcmask 1041409  }
  0x26   :  { %401 = vmatprep.subr.mxu0 %v78_v0  ;;  %v76_v2 = vld [vmem:[#allocation5 + $0x68] sm:$0xff]  ;;  %v75_v3 = vld [vmem:[#allocation5 + $0x60] sm:$0xff]  ;;  %v74_v5 = vld [vmem:[#allocation5 + $0x58] sm:$0xff] }
  0x27   :  { %402 = vmatpush3.msra.mxu0 %v78_v0  ;;  %v621_v4 = vld [vmem:[#allocation2] sm:$0xff]  ;;  %v190_v6 = vld [vmem:[#allocation7 + $0x78] sm:$0xff]  ;;  %v189_v7 = vld [vmem:[#allocation7 + $0x70] sm:$0xff] }
  0x28   :  { %403 = vmatprep.subr.mxu0 %v77_v1  ;;  %433 = vmatprep.mubr.f32.mxu0 %v621_v4  ;;  %v73_v8 = vld [vmem:[#allocation5 + $0x50] sm:$0xff]  ;;  %v188_v9 = vld [vmem:[#allocation7 + $0x68] sm:$0xff]  ;;  %v187_v11 = vld [vmem:[#allocation7 + $0x60] sm:$0xff] }
  0x29   :  { %404 = vmatpush3.msra.mxu0 %v77_v1  ;;  %439 = vmatprep.subr.mxu1 %v190_v6  ;;  %v72_v10 = vld [vmem:[#allocation5 + $0x48] sm:$0xff]  ;;  %v71_v12 = vld [vmem:[#allocation5 + $0x40] sm:$0xff]  ;;  %v186_v13 = vld [vmem:[#allocation7 + $0x58] sm:$0xff] }
  0x2a   :  { %405 = vmatprep.subr.mxu0 %v76_v2  ;;  %440 = vmatpush3.msra.mxu1 %v190_v6  ;;  %v70_v14 = vld [vmem:[#allocation5 + $0x38] sm:$0xff]  ;;  %v185_v15 = vld [vmem:[#allocation7 + $0x50] sm:$0xff]  ;;  %v184_v17 = vld [vmem:[#allocation7 + $0x48] sm:$0xff] }
  0x2b   :  { %406 = vmatpush3.msra.mxu0 %v76_v2  ;;  %441 = vmatprep.subr.mxu1 %v189_v7  ;;  %v69_v16 = vld [vmem:[#allocation5 + $0x30] sm:$0xff]  ;;  %v68_v18 = vld [vmem:[#allocation5 + $0x28] sm:$0xff]  ;;  %v183_v19 = vld [vmem:[#allocation7 + $0x40] sm:$0xff] }
  0x2c   :  { %407 = vmatprep.subr.mxu0 %v75_v3  ;;  %442 = vmatpush3.msra.mxu1 %v189_v7  ;;  %v67_v20 = vld [vmem:[#allocation5 + $0x20] sm:$0xff]  ;;  %v182_v21 = vld [vmem:[#allocation7 + $0x38] sm:$0xff]  ;;  %v181_v23 = vld [vmem:[#allocation7 + $0x30] sm:$0xff] }
  0x2d   :  { %408 = vmatpush3.msra.mxu0 %v75_v3  ;;  %443 = vmatprep.subr.mxu1 %v188_v9  ;;  %v66_v22 = vld [vmem:[#allocation5 + $0x18] sm:$0xff]  ;;  %v65_v24 = vld [vmem:[#allocation5 + $0x10] sm:$0xff]  ;;  %v180_v25 = vld [vmem:[#allocation7 + $0x28] sm:$0xff] }
  0x2e   :  { %409 = vmatprep.subr.mxu0 %v74_v5  ;;  %444 = vmatpush3.msra.mxu1 %v188_v9  ;;  %v64_v26 = vld [vmem:[#allocation5 + $0x8] sm:$0xff]  ;;  %v179_v27 = vld [vmem:[#allocation7 + $0x20] sm:$0xff]  ;;  %v626_v30 = vld [vmem:[#allocation2 + $0x10] sm:$0xff] }
  0x2f   :  { %410 = vmatpush3.msra.mxu0 %v74_v5  ;;  %445 = vmatprep.subr.mxu1 %v187_v11  ;;  %v63_v28 = vld [vmem:[#allocation5] sm:$0xff]  ;;  %v624_v29 = vld [vmem:[#allocation2 + $0x8] sm:$0xff]  ;;  %v630_v31 = vld [vmem:[#allocation2 + $0x18] sm:$0xff] }
  0x30   :  { %411 = vmatprep.subr.mxu0 %v73_v8  ;;  %446 = vmatpush3.msra.mxu1 %v187_v11  ;;  %v178_v32 = vld [vmem:[#allocation7 + $0x18] sm:$0xff]  ;;  %v177_v33 = vld [vmem:[#allocation7 + $0x10] sm:$0xff]  ;;  %v176_v34 = vld [vmem:[#allocation7 + $0x8] sm:$0xff] }
  0x31   :  { %412 = vmatpush3.msra.mxu0 %v73_v8  ;;  %447 = vmatprep.subr.mxu1 %v186_v13  ;;  %v175_v35 = vld [vmem:[#allocation7] sm:$0xff] }
  0x32   :  { %413 = vmatprep.subr.mxu0 %v72_v10  ;;  %448 = vmatpush3.msra.mxu1 %v186_v13  ;;  %v360_v36 = vld [vmem:[%s645_s2] ss:$0 sm:$0xff]  ;;  %s586_s2 = smov [#allocation8]  }
  0x33   :  { %414 = vmatpush3.msra.mxu0 %v72_v10  ;;  %449 = vmatprep.subr.mxu1 %v185_v15  ;;  %s350_s5 = sshll.u32 %s586_s2, 4  ;;  %s351_s5 = int_to_ptr.vmem [resolvable:$true] %s350_s5 }
  0x34   :  { %415 = vmatprep.subr.mxu0 %v71_v12  ;;  %450 = vmatpush3.msra.mxu1 %v185_v15  ;;  %s555_s6 = scalar_lea.vmem %s351_s5, 32  ;;  %p560_p2 = scmp.lt.s32.totalorder %s351_s5, %s351_s5 }
  0x35   :  { %416 = vmatpush3.msra.mxu0 %v71_v12  ;;  %451 = vmatprep.subr.mxu1 %v184_v17  ;;  %p556_p1 = scmp.ne.s32.totalorder %s351_s5, %s555_s6  ;;  %p561_p3 = scmp.lt.s32.totalorder %s555_s6, %s555_s6 }
  0x36   :  { %417 = vmatprep.subr.mxu0 %v70_v14  ;;  %452 = vmatpush3.msra.mxu1 %v184_v17 }
  0x37   :  { %418 = vmatpush3.msra.mxu0 %v70_v14  ;;  %453 = vmatprep.subr.mxu1 %v183_v19  ;;  %p562_p4 = por %p561_p3, %p560_p2 }
  0x38   :  { %419 = vmatprep.subr.mxu0 %v69_v16  ;;  %454 = vmatpush3.msra.mxu1 %v183_v19 }
  0x39   :  { %420 = vmatpush3.msra.mxu0 %v69_v16  ;;  %455 = vmatprep.subr.mxu1 %v182_v21  ;;  %p563_p5 = pnand %p562_p4, %p556_p1 }
  0x3a   :  { %421 = vmatprep.subr.mxu0 %v68_v18  ;;  %456 = vmatpush3.msra.mxu1 %v182_v21 }
  0x3b   :  { %422 = vmatpush3.msra.mxu0 %v68_v18  ;;  %457 = vmatprep.subr.mxu1 %v181_v23 }
  0x3c   :  { %423 = vmatprep.subr.mxu0 %v67_v20  ;;  %458 = vmatpush3.msra.mxu1 %v181_v23 }
  0x3d   :  { %424 = vmatpush3.msra.mxu0 %v67_v20  ;;  %459 = vmatprep.subr.mxu1 %v180_v25 }
  0x3e   :  { %425 = vmatprep.subr.mxu0 %v66_v22  ;;  %460 = vmatpush3.msra.mxu1 %v180_v25 }
  0x3f   :  { %426 = vmatpush3.msra.mxu0 %v66_v22  ;;  %461 = vmatprep.subr.mxu1 %v179_v27 }
  0x40   :  { %427 = vmatprep.subr.mxu0 %v65_v24  ;;  %462 = vmatpush3.msra.mxu1 %v179_v27 }
  0x41   :  { %428 = vmatpush3.msra.mxu0 %v65_v24  ;;  %463 = vmatprep.subr.mxu1 %v178_v32 }
  0x42   :  { %429 = vmatprep.subr.mxu0 %v64_v26  ;;  %464 = vmatpush3.msra.mxu1 %v178_v32 }
  0x43   :  { %430 = vmatpush3.msra.mxu0 %v64_v26  ;;  %465 = vmatprep.subr.mxu1 %v177_v33 }
  0x44   :  { %431 = vmatprep.subr.mxu0 %v63_v28  ;;  %466 = vmatpush3.msra.mxu1 %v177_v33 }
  0x45   :  { %432 = vmatpush3.msra.mxu0 %v63_v28  ;;  %467 = vmatprep.subr.mxu1 %v176_v34 }
  0x46   :  { %434 = vmatmul.mubr.f32.vlgmr.msra.gmra.mxu0 %v624_v29  ;;  %468 = vmatpush3.msra.mxu1 %v176_v34 }
  0x47   :  { %436 = vmatprep.mubr.f32.mxu0 %v626_v30  ;;  %469 = vmatprep.subr.mxu1 %v175_v35 }
  0x48   :  { %470 = vmatpush3.msra.mxu1 %v175_v35 }
  0x4a   :  { %437 = vmatmul.mubr.f32.gmra.mxu0 %v630_v31 }
 0x106   :  { %v435_v37 = vpop.f32.mrf.mxu0 }
 0x107   :  { %v158_v38 = vadd.f32 %v435_v37, %v360_v36 }
 0x108   :  { %v152_v39 = vpop.f32.mrf.mxu0 }
 0x109   :  { %v153_v40 = vadd.f32 %v360_v36, %v152_v39  ;;  %v172_v43 = vmax.f32 %v158_v38, 0.0 }
 0x10a   :  { %v438_v41 = vpop.f32.mrf.mxu0 }
 0x10b   :  { %v171_v42 = vmax.f32 %v153_v40, 0.0  ;;  %v168_v44 = vadd.f32 %v438_v41, %v360_v36 }
 0x10c   :  { %v162_v45 = vpop.f32.mrf.mxu0 }
 0x10d   :  { %v163_v46 = vadd.f32 %v360_v36, %v162_v45  ;;  %471 = vmatprep.mubr.f32.mxu1 %v171_v42  ;;  %v174_v48 = vmax.f32 %v168_v44, 0.0 }
 0x10e   :  { %472 = vmatmul.mubr.f32.vlgmr.msra.gmra.mxu1 %v172_v43 }
 0x10f   :  { %v173_v47 = vmax.f32 %v163_v46, 0.0 }
 0x111   :  { %474 = vmatprep.mubr.f32.mxu1 %v173_v47 }
 0x112   :  { %475 = vmatmul.mubr.f32.gmra.mxu1 %v174_v48 }
 0x1ce   :  { %v473_v49 = vpop.f32.mrf.mxu1 }
 0x1d0   :  { %v257_v50 = vpop.f32.mrf.mxu1 }
 0x1d1   :  { %v276_v51 = vmax.f32 %v257_v50, %v473_v49 }
 0x1d2   :  { %v476_v52 = vpop.f32.mrf.mxu1 }
 0x1d3   :  { %v277_v53 = vrot.slane %v276_v51, 4 }
 0x1d4   :  { %v267_v54 = vpop.f32.mrf.mxu1 }
 0x1d5   :  { %v278_v55 = vmax.f32 %v276_v51, %v277_v53  ;;  %v283_v56 = vmax.f32 %v267_v54, %v476_v52 }
 0x1d7   :  { %v279_v57 = vrot.slane %v278_v55, 2  ;;  %v284_v58 = vrot.slane %v283_v56, 4 }
 0x1d9   :  { %v280_v59 = vmax.f32 %v278_v55, %v279_v57  ;;  %v285_v60 = vmax.f32 %v283_v56, %v284_v58 }
 0x1db   :  { %v281_v61 = vrot.slane %v280_v59, 1  ;;  %v286_v62 = vrot.slane %v285_v60, 2 }
 0x1dd   :  { %v282_v63 = vmax.f32 %v280_v59, %v281_v61  ;;  %v287_v0 = vmax.f32 %v285_v60, %v286_v62 }
 0x1df   :  { %v290_v1 = vsub.f32 %v257_v50, %v282_v63  ;;  %v291_v2 = vsub.f32 %v473_v49, %v282_v63  ;;  %v288_v3 = vrot.slane %v287_v0, 1 }
 0x1e1   :  { %v294_v5 = vmul.f32 1.442695, %v290_v1  ;;  %v296_v6 = vmul.f32 1.442695, %v291_v2  ;;  %v289_v7 = vmax.f32 %v287_v0, %v288_v3 }
 0x1e3   :  { %483 = vpow2.f32 %v294_v5  ;;  %v292_v8 = vsub.f32 %v267_v54, %v289_v7  ;;  %v293_v9 = vsub.f32 %v476_v52, %v289_v7 }
 0x1e4   :  { %485 = vpow2.f32 %v296_v6 }
 0x1e5   :  { %v298_v10 = vmul.f32 1.442695, %v292_v8  ;;  %v300_v11 = vmul.f32 1.442695, %v293_v9 }
 0x1e7   :  { %487 = vpow2.f32 %v298_v10 }
 0x1e8   :  { %489 = vpow2.f32 %v300_v11 }
 0x1f0   :  { %v484_v12 = vpop.eup %483 }
 0x1f1   :  { %v486_v13 = vpop.eup %485  ;;  %v302_v16 = vmul.f32 %v484_v12, %v621_v4 }
 0x1f2   :  { %v320_v14 = vadd.f32 %v486_v13, %v484_v12  ;;  %v303_v18 = vmul.f32 %v486_v13, %v624_v29 }
 0x1f4   :  { %v488_v15 = vpop.eup %487  ;;  %v321_v17 = vrot.slane %v320_v14, 4  ;;  %v306_v26 = vadd.f32 %v303_v18, %v302_v16 }
 0x1f5   :  { %v490_v19 = vpop.eup %489  ;;  %v304_v20 = vmul.f32 %v488_v15, %v626_v30 }
 0x1f6   :  { %v322_v21 = vadd.f32 %v321_v17, %v320_v14  ;;  %v327_v22 = vadd.f32 %v490_v19, %v488_v15  ;;  %v305_v23 = vmul.f32 %v490_v19, %v630_v31  ;;  %v307_v35 = vrot.slane %v306_v26, 4 }
 0x1f8   :  { %v323_v24 = vrot.slane %v322_v21, 2  ;;  %v328_v25 = vrot.slane %v327_v22, 4  ;;  %v313_v27 = vadd.f32 %v305_v23, %v304_v20  ;;  %v308_v38 = vadd.f32 %v307_v35, %v306_v26 }
 0x1fa   :  { %v324_v28 = vadd.f32 %v323_v24, %v322_v21  ;;  %v329_v32 = vadd.f32 %v328_v25, %v327_v22  ;;  %v314_v4 = vrot.slane %v313_v27, 4  ;;  %v309_v40 = vrot.slane %v308_v38, 2 }
 0x1fc   :  { %v325_v33 = vrot.slane %v324_v28, 1  ;;  %v330_v34 = vrot.slane %v329_v32, 2  ;;  %v315_v39 = vadd.f32 %v314_v4, %v313_v27  ;;  %v310_v31 = vadd.f32 %v309_v40, %v308_v38 }
 0x1fe   :  { %v331_v36 = vadd.f32 %v330_v34, %v329_v32  ;;  %v326_v37 = vadd.f32 %v325_v33, %v324_v28  ;;  %v316_v41 = vrot.slane %v315_v39, 2  ;;  %v311_v43 = vrot.slane %v310_v31, 1 }
 0x200   :  { %v332_v29 = vrot.slane %v331_v36, 1  ;;  %491 = vrcp.f32 %v326_v37  ;;  %v317_v42 = vadd.f32 %v316_v41, %v315_v39  ;;  %v312_v46 = vadd.f32 %v311_v43, %v310_v31 }
 0x202   :  { %v333_v30 = vadd.f32 %v332_v29, %v331_v36  ;;  %v318_v44 = vrot.slane %v317_v42, 1 }
 0x204   :  { %493 = vrcp.f32 %v333_v30  ;;  %v319_v47 = vadd.f32 %v318_v44, %v317_v42 }
 0x20d   :  { %v492_v45 = vpop.eup %491 }
 0x20e   :  { %v336_v49 = vmul.f32 %v492_v45, %v312_v46 }
 0x211   :  { %v494_v48 = vpop.eup %493 }
 0x212   :  { %v337_v50 = vmul.f32 %v494_v48, %v319_v47 }
 0x214   :  { %v341_v51 = vsel %vm340_vm0, %v337_v50, %v336_v49 }
 0x215   :  { %343 = vst [vmem:[#allocation8] sm:$0x3] %v341_v51 }
 0x216   :  { %566 = shalt.err (!%p563_p5)
}
 0x217   :  { %353 = dma.vmem_to_hbm [thread:$0]  %s351_s5, 32, %s647_s4, [#allocation4]  }
 0x218   :  { %579 = dma.done.wait [#allocation4], 32  }
 0x219   :  { %580 = vsyncadd [#allocation4], 4294967264 }
 0x21a   :  { %357 = vsyncpa [#allocation3], 1 }
 0x21b   :  { %358 = vsyncpa [#allocation6], 1 }
 0x21c   :  { %359 = vsyncpa [#allocation4], 1 }

</bundles_post_ra>
